<compile_context>
chip_gen: v7x
topology: tpu7x:2x2x1
jax: 0.10.0
libtpu: 0.0.40
codegen_flags: <defaults>
</compile_context>

<pallas_src>
import numpy as np
import jax
import jax.numpy as jnp
from jax.experimental import pallas as pl
from jax.experimental.pallas import tpu as pltpu


def _cdiv(a, b):
    return -(-a // b)


def _ceil_to(x, m):
    return _cdiv(x, m) * m


def _emb_row_template(T, E, F, fourier, dtype):
    """(1, 1, T*(F+E)) row: sinusoidal time embedding at its interleaved lane positions,
    zeros at the data lane positions.  Computed once at trace time (static in T/E/fourier)."""
    t = jnp.arange(T, dtype=jnp.float32)[:, None]                        # (T, 1)
    a = jnp.floor(jnp.arange(E, dtype=jnp.float32) / 2.0) * 2.0 / E      # (E,)
    s = (0.0001 ** a) if fourier else (2.0 * np.pi / 1440.0) * a
    b = t * s[None, :]                                                   # (T, E)
    even = (jnp.arange(E) % 2) == 0
    c = jnp.where(even[None, :], jnp.sin(b), jnp.cos(b))                 # (T, E)
    row = jnp.concatenate([jnp.zeros((T, F), jnp.float32), c], axis=-1)  # (T, F+E)
    return row.astype(dtype).reshape(1, 1, T * (F + E))


def _pick_tile_n(N, W_in, W_out, itemsize, sub,
                 vmem_budget_bytes=12 << 20, hard_cap=4096):
    """Largest node tile whose double-buffered in+out blocks fit the budget, counting the
    real (padded) VMEM occupancy: rows pad to the sublane multiple, lanes pad to 128."""
    lanes_in = _ceil_to(W_in, 128)
    lanes_out = _ceil_to(W_out, 128)
    table_bytes = 2 * sub * lanes_out * itemsize                # double-buffered template
    per_row = 2 * (lanes_in + lanes_out) * itemsize             # double-buffered in + out
    max_rows = max(1, (vmem_budget_bytes - table_bytes) // per_row)
    tn = int(min(N, max_rows, hard_cap))
    if tn >= N:
        return N                    # node dim == full N satisfies the (8,128) block rule
    tn = (tn // sub) * sub          # tiled along N: keep the node dim a sublane multiple
    return tn if tn >= sub else N   # degenerate budget -> fall back to whole N


def _ensure_two_tiles(tn, N, B, sub):
    """v7x has 2 TensorCores per chip: for non-trivial workloads make sure the parallel
    grid has at least 2 steps so both cores get work."""
    if B * _cdiv(N, tn) >= 2 or N <= sub:
        return tn
    half = _ceil_to(_cdiv(N, 2), sub)
    return half if half < N else tn


def _make_kernel(tn, T, F, E, row_chunk):
    Fp = F + E
    W_out = T * Fp

    def kernel(data_ref, emb_ref, out_ref):
        # data_ref: (1, tn, T*F)   emb_ref: (1, 1, T*(F+E))   out_ref: (1, tn, T*(F+E))
        # (1) Dense base: broadcast the pre-interleaved embedding template over the node
        #     axis in bounded row chunks (full-width unmasked stores, bounded vreg use).
        for r0 in range(0, tn, row_chunk):
            rc = min(row_chunk, tn - r0)
            out_ref[:, r0:r0 + rc, :] = jnp.broadcast_to(emb_ref[...], (1, rc, W_out))
        # (2) Scatter the data columns to their interleaved lane offsets.
        #     T static narrow stores; all offsets are compile-time constants.
        for t in range(T):
            out_ref[:, :, t * Fp:t * Fp + F] = data_ref[:, :, t * F:(t + 1) * F]

    return kernel


def add_time_embedding(data, embedding_dim=13, fourier=False, node_tile=None):
    """Pallas TPU implementation of the torch `add_time_embedding` forward.

    data: (B, N, T) or (B, N, T, F); returns (B, N, T, F + embedding_dim)."""
    if data.ndim == 3:
        data = data[..., None]
    B, N, T, F = (int(d) for d in data.shape)
    E = int(embedding_dim)
    dtype = data.dtype
    itemsize = jnp.dtype(dtype).itemsize

    W_in = T * F
    W_out = T * (F + E)

    # Lane-dense views: pure reshapes of row-major data, identical HBM bytes.
    data_flat = data.reshape(B, N, W_in)
    emb_row = _emb_row_template(T, E, F, fourier, dtype)      # (1, 1, W_out)

    sub = max(8, 32 // itemsize)    # sublane packing: f32 -> 8, bf16 -> 16, int8 -> 32
    if node_tile is not None:       # test hook (exercise ragged tiling)
        tn = min(int(node_tile), N)
        if tn < N and tn % 8 != 0:
            raise ValueError("node_tile must be a multiple of 8 when it tiles N")
    else:
        tn = _pick_tile_n(N, W_in, W_out, itemsize, sub)
        tn = _ensure_two_tiles(tn, N, B, sub)

    grid = (B, _cdiv(N, tn))
    row_chunk = min(tn, 256)

    cost = pl.CostEstimate(
        flops=0,
        transcendentals=0,
        bytes_accessed=(B * N * (W_in + W_out) + W_out) * itemsize,
    )

    out_flat = pl.pallas_call(
        _make_kernel(tn, T, F, E, row_chunk),
        out_shape=jax.ShapeDtypeStruct((B, N, W_out), dtype),
        grid=grid,
        in_specs=[
            pl.BlockSpec((1, tn, W_in), lambda b, n: (b, n, 0)),
            # Tiny constant table (same block every step).
            # TODO(synk): pipeline_mode=pl.Buffered(1) would drop its 2nd buffer (~1 KiB);
            # skipped to keep lowering robust.
            pl.BlockSpec((1, 1, W_out), lambda b, n: (0, 0, 0)),
        ],
        out_specs=pl.BlockSpec((1, tn, W_out), lambda b, n: (b, n, 0)),
        compiler_params=pltpu.CompilerParams(
            dimension_semantics=("parallel", "parallel"),
            vmem_limit_bytes=32 * 1024 * 1024,
        ),
        cost_estimate=cost,
    )(data_flat, emb_row)

    return out_flat.reshape(B, N, T, F + E)


def _reference(data, embedding_dim=13, fourier=False):
    # Pure-JAX reference mirroring the PyTorch forward.
    if data.ndim == 3:
        data = data[..., None]
    B, N, T, F = data.shape
    E = embedding_dim
    t = jnp.arange(T, dtype=jnp.float32)[:, None]
    a = jnp.floor(jnp.arange(E, dtype=jnp.float32) / 2.0) * 2.0 / E
    s = (0.0001 ** a) if fourier else (2.0 * np.pi / 1440.0) * a
    b = t * s[None, :]
    even = (jnp.arange(E) % 2) == 0
    c = jnp.where(even[None, :], jnp.sin(b), jnp.cos(b))
    c = jnp.broadcast_to(c[None, None], (B, N, T, E)).astype(data.dtype)
    return jnp.concatenate([data, c], axis=-1)


if __name__ == "__main__":
    key = jax.random.PRNGKey(0)
    B, N, T, F = 2, 4, 16, 3
    x = jax.random.normal(key, (B, N, T, F), dtype=jnp.float32)

    # non-fourier, 4D input
    out = jax.block_until_ready(add_time_embedding(x, embedding_dim=13, fourier=False))
    ref = _reference(x, embedding_dim=13, fourier=False)
    assert out.shape == (B, N, T, F + 13), out.shape
    np.testing.assert_allclose(np.asarray(out), np.asarray(ref), rtol=1e-5, atol=1e-5)

    # fourier path
    out_f = jax.block_until_ready(add_time_embedding(x, embedding_dim=13, fourier=True))
    ref_f = _reference(x, embedding_dim=13, fourier=True)
    np.testing.assert_allclose(np.asarray(out_f), np.asarray(ref_f), rtol=1e-5, atol=1e-5)

    # 3D input (unsqueezed to F=1)
    x3 = jax.random.normal(jax.random.PRNGKey(1), (B, N, T), dtype=jnp.float32)
    out3 = jax.block_until_ready(add_time_embedding(x3, embedding_dim=13, fourier=False))
    ref3 = _reference(x3, embedding_dim=13, fourier=False)
    assert out3.shape == (B, N, T, 1 + 13), out3.shape
    np.testing.assert_allclose(np.asarray(out3), np.asarray(ref3), rtol=1e-5, atol=1e-5)

    # ragged N tiling (N % tile != 0) exercises the OOB-masked last block
    xr = jax.random.normal(jax.random.PRNGKey(2), (1, 20, T, F), dtype=jnp.float32)
    outr = jax.block_until_ready(
        add_time_embedding(xr, embedding_dim=13, fourier=False, node_tile=8))
    refr = _reference(xr, embedding_dim=13, fourier=False)
    np.testing.assert_allclose(np.asarray(outr), np.asarray(refr), rtol=1e-5, atol=1e-5)

    print("KERNEL_OK")
</pallas_src>

<mosaic_0001>
module attributes {stable_mosaic.version = 11 : i64} {
  func.func @kernel(%arg0: i32, %arg1: i32, %arg2: memref<1x4x48xf32, #tpu.memory_space<vmem>>, %arg3: memref<1x1x256xf32, #tpu.memory_space<vmem>>, %arg4: memref<1x4x256xf32, #tpu.memory_space<vmem>>) attributes {dimension_semantics = [#tpu.dimension_semantics<parallel>, #tpu.dimension_semantics<parallel>], iteration_bounds = array<i64: 2, 1>, scalar_prefetch = 0 : i64, scratch_operands = 0 : i64, tpu.core_type = #tpu.core_type<tc>, window_params = [{transform_indices = @transform_0, window_bounds = array<i64: 1, 4, 48>}, {pipeline_mode = #tpu.pipeline_mode<synchronous>, transform_indices = @transform_1, window_bounds = array<i64: 1, 1, 256>}, {transform_indices = @transform_2, window_bounds = array<i64: 1, 4, 256>}]} {
    %c0 = arith.constant 0 : index
    %c0_0 = arith.constant 0 : index
    %c0_1 = arith.constant 0 : index
    %0 = vector.load %arg3[%c0, %c0_0, %c0_1] : memref<1x1x256xf32, #tpu.memory_space<vmem>>, vector<1x1x256xf32>
    %1 = vector.shape_cast %0 : vector<1x1x256xf32> to vector<1x1x256xf32>
    %2 = vector.broadcast %1 : vector<1x1x256xf32> to vector<1x4x256xf32>
    %c0_2 = arith.constant 0 : index
    %c0_3 = arith.constant 0 : index
    %c0_4 = arith.constant 0 : index
    %3 = vector.load %arg4[%c0_2, %c0_3, %c0_4] : memref<1x4x256xf32, #tpu.memory_space<vmem>>, vector<1x4x256xf32>
    tpu.vector_store %arg4[%c0_2, %c0_3, %c0_4], %2 {strides = array<i32>} : memref<1x4x256xf32, #tpu.memory_space<vmem>>, vector<1x4x256xf32>,
    %c0_5 = arith.constant 0 : index
    %c0_6 = arith.constant 0 : index
    %c0_7 = arith.constant 0 : index
    %4 = vector.load %arg2[%c0_5, %c0_6, %c0_7] : memref<1x4x48xf32, #tpu.memory_space<vmem>>, vector<1x4x3xf32>
    %c0_8 = arith.constant 0 : index
    %c0_9 = arith.constant 0 : index
    %c0_10 = arith.constant 0 : index
    %5 = vector.load %arg4[%c0_8, %c0_9, %c0_10] : memref<1x4x256xf32, #tpu.memory_space<vmem>>, vector<1x4x3xf32>
    tpu.vector_store %arg4[%c0_8, %c0_9, %c0_10], %4 {strides = array<i32>} : memref<1x4x256xf32, #tpu.memory_space<vmem>>, vector<1x4x3xf32>,
    %c0_11 = arith.constant 0 : index
    %c0_12 = arith.constant 0 : index
    %c3 = arith.constant 3 : index
    %6 = vector.load %arg2[%c0_11, %c0_12, %c3] : memref<1x4x48xf32, #tpu.memory_space<vmem>>, vector<1x4x3xf32>
    %c0_13 = arith.constant 0 : index
    %c0_14 = arith.constant 0 : index
    %c16 = arith.constant 16 : index
    %7 = vector.load %arg4[%c0_13, %c0_14, %c16] : memref<1x4x256xf32, #tpu.memory_space<vmem>>, vector<1x4x3xf32>
    tpu.vector_store %arg4[%c0_13, %c0_14, %c16], %6 {strides = array<i32>} : memref<1x4x256xf32, #tpu.memory_space<vmem>>, vector<1x4x3xf32>,
    %c0_15 = arith.constant 0 : index
    %c0_16 = arith.constant 0 : index
    %c6 = arith.constant 6 : index
    %8 = vector.load %arg2[%c0_15, %c0_16, %c6] : memref<1x4x48xf32, #tpu.memory_space<vmem>>, vector<1x4x3xf32>
    %c0_17 = arith.constant 0 : index
    %c0_18 = arith.constant 0 : index
    %c32 = arith.constant 32 : index
    %9 = vector.load %arg4[%c0_17, %c0_18, %c32] : memref<1x4x256xf32, #tpu.memory_space<vmem>>, vector<1x4x3xf32>
    tpu.vector_store %arg4[%c0_17, %c0_18, %c32], %8 {strides = array<i32>} : memref<1x4x256xf32, #tpu.memory_space<vmem>>, vector<1x4x3xf32>,
    %c0_19 = arith.constant 0 : index
    %c0_20 = arith.constant 0 : index
    %c9 = arith.constant 9 : index
    %10 = vector.load %arg2[%c0_19, %c0_20, %c9] : memref<1x4x48xf32, #tpu.memory_space<vmem>>, vector<1x4x3xf32>
    %c0_21 = arith.constant 0 : index
    %c0_22 = arith.constant 0 : index
    %c48 = arith.constant 48 : index
    %11 = vector.load %arg4[%c0_21, %c0_22, %c48] : memref<1x4x256xf32, #tpu.memory_space<vmem>>, vector<1x4x3xf32>
    tpu.vector_store %arg4[%c0_21, %c0_22, %c48], %10 {strides = array<i32>} : memref<1x4x256xf32, #tpu.memory_space<vmem>>, vector<1x4x3xf32>,
    %c0_23 = arith.constant 0 : index
    %c0_24 = arith.constant 0 : index
    %c12 = arith.constant 12 : index
    %12 = vector.load %arg2[%c0_23, %c0_24, %c12] : memref<1x4x48xf32, #tpu.memory_space<vmem>>, vector<1x4x3xf32>
    %c0_25 = arith.constant 0 : index
    %c0_26 = arith.constant 0 : index
    %c64 = arith.constant 64 : index
    %13 = vector.load %arg4[%c0_25, %c0_26, %c64] : memref<1x4x256xf32, #tpu.memory_space<vmem>>, vector<1x4x3xf32>
    tpu.vector_store %arg4[%c0_25, %c0_26, %c64], %12 {strides = array<i32>} : memref<1x4x256xf32, #tpu.memory_space<vmem>>, vector<1x4x3xf32>,
    %c0_27 = arith.constant 0 : index
    %c0_28 = arith.constant 0 : index
    %c15 = arith.constant 15 : index
    %14 = vector.load %arg2[%c0_27, %c0_28, %c15] : memref<1x4x48xf32, #tpu.memory_space<vmem>>, vector<1x4x3xf32>
    %c0_29 = arith.constant 0 : index
    %c0_30 = arith.constant 0 : index
    %c80 = arith.constant 80 : index
    %15 = vector.load %arg4[%c0_29, %c0_30, %c80] : memref<1x4x256xf32, #tpu.memory_space<vmem>>, vector<1x4x3xf32>
    tpu.vector_store %arg4[%c0_29, %c0_30, %c80], %14 {strides = array<i32>} : memref<1x4x256xf32, #tpu.memory_space<vmem>>, vector<1x4x3xf32>,
    %c0_31 = arith.constant 0 : index
    %c0_32 = arith.constant 0 : index
    %c18 = arith.constant 18 : index
    %16 = vector.load %arg2[%c0_31, %c0_32, %c18] : memref<1x4x48xf32, #tpu.memory_space<vmem>>, vector<1x4x3xf32>
    %c0_33 = arith.constant 0 : index
    %c0_34 = arith.constant 0 : index
    %c96 = arith.constant 96 : index
    %17 = vector.load %arg4[%c0_33, %c0_34, %c96] : memref<1x4x256xf32, #tpu.memory_space<vmem>>, vector<1x4x3xf32>
    tpu.vector_store %arg4[%c0_33, %c0_34, %c96], %16 {strides = array<i32>} : memref<1x4x256xf32, #tpu.memory_space<vmem>>, vector<1x4x3xf32>,
    %c0_35 = arith.constant 0 : index
    %c0_36 = arith.constant 0 : index
    %c21 = arith.constant 21 : index
    %18 = vector.load %arg2[%c0_35, %c0_36, %c21] : memref<1x4x48xf32, #tpu.memory_space<vmem>>, vector<1x4x3xf32>
    %c0_37 = arith.constant 0 : index
    %c0_38 = arith.constant 0 : index
    %c112 = arith.constant 112 : index
    %19 = vector.load %arg4[%c0_37, %c0_38, %c112] : memref<1x4x256xf32, #tpu.memory_space<vmem>>, vector<1x4x3xf32>
    tpu.vector_store %arg4[%c0_37, %c0_38, %c112], %18 {strides = array<i32>} : memref<1x4x256xf32, #tpu.memory_space<vmem>>, vector<1x4x3xf32>,
    %c0_39 = arith.constant 0 : index
    %c0_40 = arith.constant 0 : index
    %c24 = arith.constant 24 : index
    %20 = vector.load %arg2[%c0_39, %c0_40, %c24] : memref<1x4x48xf32, #tpu.memory_space<vmem>>, vector<1x4x3xf32>
    %c0_41 = arith.constant 0 : index
    %c0_42 = arith.constant 0 : index
    %c128 = arith.constant 128 : index
    %21 = vector.load %arg4[%c0_41, %c0_42, %c128] : memref<1x4x256xf32, #tpu.memory_space<vmem>>, vector<1x4x3xf32>
    tpu.vector_store %arg4[%c0_41, %c0_42, %c128], %20 {strides = array<i32>} : memref<1x4x256xf32, #tpu.memory_space<vmem>>, vector<1x4x3xf32>,
    %c0_43 = arith.constant 0 : index
    %c0_44 = arith.constant 0 : index
    %c27 = arith.constant 27 : index
    %22 = vector.load %arg2[%c0_43, %c0_44, %c27] : memref<1x4x48xf32, #tpu.memory_space<vmem>>, vector<1x4x3xf32>
    %c0_45 = arith.constant 0 : index
    %c0_46 = arith.constant 0 : index
    %c144 = arith.constant 144 : index
    %23 = vector.load %arg4[%c0_45, %c0_46, %c144] : memref<1x4x256xf32, #tpu.memory_space<vmem>>, vector<1x4x3xf32>
    tpu.vector_store %arg4[%c0_45, %c0_46, %c144], %22 {strides = array<i32>} : memref<1x4x256xf32, #tpu.memory_space<vmem>>, vector<1x4x3xf32>,
    %c0_47 = arith.constant 0 : index
    %c0_48 = arith.constant 0 : index
    %c30 = arith.constant 30 : index
    %24 = vector.load %arg2[%c0_47, %c0_48, %c30] : memref<1x4x48xf32, #tpu.memory_space<vmem>>, vector<1x4x3xf32>
    %c0_49 = arith.constant 0 : index
    %c0_50 = arith.constant 0 : index
    %c160 = arith.constant 160 : index
    %25 = vector.load %arg4[%c0_49, %c0_50, %c160] : memref<1x4x256xf32, #tpu.memory_space<vmem>>, vector<1x4x3xf32>
    tpu.vector_store %arg4[%c0_49, %c0_50, %c160], %24 {strides = array<i32>} : memref<1x4x256xf32, #tpu.memory_space<vmem>>, vector<1x4x3xf32>,
    %c0_51 = arith.constant 0 : index
    %c0_52 = arith.constant 0 : index
    %c33 = arith.constant 33 : index
    %26 = vector.load %arg2[%c0_51, %c0_52, %c33] : memref<1x4x48xf32, #tpu.memory_space<vmem>>, vector<1x4x3xf32>
    %c0_53 = arith.constant 0 : index
    %c0_54 = arith.constant 0 : index
    %c176 = arith.constant 176 : index
    %27 = vector.load %arg4[%c0_53, %c0_54, %c176] : memref<1x4x256xf32, #tpu.memory_space<vmem>>, vector<1x4x3xf32>
    tpu.vector_store %arg4[%c0_53, %c0_54, %c176], %26 {strides = array<i32>} : memref<1x4x256xf32, #tpu.memory_space<vmem>>, vector<1x4x3xf32>,
    %c0_55 = arith.constant 0 : index
    %c0_56 = arith.constant 0 : index
    %c36 = arith.constant 36 : index
    %28 = vector.load %arg2[%c0_55, %c0_56, %c36] : memref<1x4x48xf32, #tpu.memory_space<vmem>>, vector<1x4x3xf32>
    %c0_57 = arith.constant 0 : index
    %c0_58 = arith.constant 0 : index
    %c192 = arith.constant 192 : index
    %29 = vector.load %arg4[%c0_57, %c0_58, %c192] : memref<1x4x256xf32, #tpu.memory_space<vmem>>, vector<1x4x3xf32>
    tpu.vector_store %arg4[%c0_57, %c0_58, %c192], %28 {strides = array<i32>} : memref<1x4x256xf32, #tpu.memory_space<vmem>>, vector<1x4x3xf32>,
    %c0_59 = arith.constant 0 : index
    %c0_60 = arith.constant 0 : index
    %c39 = arith.constant 39 : index
    %30 = vector.load %arg2[%c0_59, %c0_60, %c39] : memref<1x4x48xf32, #tpu.memory_space<vmem>>, vector<1x4x3xf32>
    %c0_61 = arith.constant 0 : index
    %c0_62 = arith.constant 0 : index
    %c208 = arith.constant 208 : index
    %31 = vector.load %arg4[%c0_61, %c0_62, %c208] : memref<1x4x256xf32, #tpu.memory_space<vmem>>, vector<1x4x3xf32>
    tpu.vector_store %arg4[%c0_61, %c0_62, %c208], %30 {strides = array<i32>} : memref<1x4x256xf32, #tpu.memory_space<vmem>>, vector<1x4x3xf32>,
    %c0_63 = arith.constant 0 : index
    %c0_64 = arith.constant 0 : index
    %c42 = arith.constant 42 : index
    %32 = vector.load %arg2[%c0_63, %c0_64, %c42] : memref<1x4x48xf32, #tpu.memory_space<vmem>>, vector<1x4x3xf32>
    %c0_65 = arith.constant 0 : index
    %c0_66 = arith.constant 0 : index
    %c224 = arith.constant 224 : index
    %33 = vector.load %arg4[%c0_65, %c0_66, %c224] : memref<1x4x256xf32, #tpu.memory_space<vmem>>, vector<1x4x3xf32>
    tpu.vector_store %arg4[%c0_65, %c0_66, %c224], %32 {strides = array<i32>} : memref<1x4x256xf32, #tpu.memory_space<vmem>>, vector<1x4x3xf32>,
    %c0_67 = arith.constant 0 : index
    %c0_68 = arith.constant 0 : index
    %c45 = arith.constant 45 : index
    %34 = vector.load %arg2[%c0_67, %c0_68, %c45] : memref<1x4x48xf32, #tpu.memory_space<vmem>>, vector<1x4x3xf32>
    %c0_69 = arith.constant 0 : index
    %c0_70 = arith.constant 0 : index
    %c240 = arith.constant 240 : index
    %35 = vector.load %arg4[%c0_69, %c0_70, %c240] : memref<1x4x256xf32, #tpu.memory_space<vmem>>, vector<1x4x3xf32>
    tpu.vector_store %arg4[%c0_69, %c0_70, %c240], %34 {strides = array<i32>} : memref<1x4x256xf32, #tpu.memory_space<vmem>>, vector<1x4x3xf32>,
    return
  }
  func.func @transform_0(%arg0: i32, %arg1: i32) -> (i32, i32, i32) {
    %c0_i32 = arith.constant 0 : i32
    %c0_i32_0 = arith.constant 0 : i32
    return %arg0, %arg1, %c0_i32 : i32, i32, i32
  }
  func.func @transform_1(%arg0: i32, %arg1: i32) -> (i32, i32, i32) {
    %c0_i32 = arith.constant 0 : i32
    %c0_i32_0 = arith.constant 0 : i32
    %c0_i32_1 = arith.constant 0 : i32
    %c0_i32_2 = arith.constant 0 : i32
    return %c0_i32, %c0_i32_0, %c0_i32_1 : i32, i32, i32
  }
  func.func @transform_2(%arg0: i32, %arg1: i32) -> (i32, i32, i32) {
    %c0_i32 = arith.constant 0 : i32
    %c0_i32_0 = arith.constant 0 : i32
    return %arg0, %arg1, %c0_i32 : i32, i32, i32
  }
}

</mosaic_0001>

<bundles_post_ra>
// kernel: tpu_custom_call.1
= control target key start
LH: loop header
LB: loop body
LE: loop exit
PB: predicated region body
PF: predicated region fallthrough
CT: control target
= control target key end

     0   :  { %7 = vsyncpa [#allocation3], 0  ;;  %s842_s0 = inlined_call_operand.hbm [shape: f32[2,4,48], index: 0, kind: input, shape index: {}]   ;;  %s843_s1 = inlined_call_operand.vmem [shape: f32[1,1,256], index: 1, kind: input, shape index: {}]   ;;  %s844_s2 = inlined_call_operand.hbm [shape: f32[2,4,256], index: 2, kind: output, shape index: {}]  }
   0x1   :  { %9 = vsyncpa [#allocation3 + $0x1], 0 }
   0x2   :  { %10 = vsyncpa [#allocation4], 0 }
   0x3   :  { %12 = vsyncpa [#allocation4 + $0x1], 0  ;;  %s626_s9 = smov 0   ;;  %s628_s10 = smov 0  }
   0x4   :  { %s630_s11 = smov 0   ;;  %s632_s12 = smov 0  }
   0x5   :  { %s634_s13 = smov 0   ;;  %s636_s14 = smov 0  }
   0x6 LB: > { %s388_s15 = sadd.s32 4294967295, %s592_s14   ;;  %s389_s16 = sadd.s32 4294967294, %s592_s14   ;;  %s592_s14 = sphi %s636_s14, %s18_s14   ;;  %s588_s13 = sphi %s634_s13, %s860_s13   ;;  %s584_s12 = sphi %s632_s12, %s859_s12   ;;  %s580_s11 = sphi %s630_s11, %s858_s11   ;;  %s576_s10 = sphi %s628_s10, %s857_s10   ;;  %s572_s9 = sphi %s626_s9, %s856_s9  }
   0x7   : > { %s30_s17 = sadd.s32 1, %s588_s13  ;;  %s39_s18 = sadd.s32 1, %s580_s11 }
   0x8   : > { %p32_p0 = scmp.ge.s32.totalorder %s30_s17, 2  ;;  %p46_p1 = scmp.ne.s32.totalorder %s580_s11, %s576_s10 }
   0x9   : > { %p47_p2 = scmp.eq.s32.totalorder %s592_s14, 0  ;;  %p52_p3 = scmp.ne.s32.totalorder %s576_s10, %s572_s9 }
   0xa   : > { %s862_s17 = smov (%p32_p0, %s30_s17), 0  ;;  %p53_p5 = scmp.eq.s32.totalorder %s388_s15, 0 }
   0xb   : > { %p667_p4 = por %p47_p2, %p46_p1  ;;  %s34_s20 = ssub.s32 %s588_s13, %s862_s17 }
   0xc   : > { %p99_p6 = scmp.eq.s32.totalorder %s388_s15, 1  ;;  %p37_p7 = scmp.eq.s32.totalorder %s34_s20, 0 }
   0xd   : > { %p673_p8 = por %p53_p5, %p52_p3  ;;  %p105_p10 = scmp.eq.s32.totalorder %s389_s16, 1 }
   0xe   : > { %p677_p9 = por %p99_p6, %p46_p1  ;;  %p415_p13 = scmp.lt.s32.totalorder %s592_s14, 2 }
   0xf   : > { %s682_s23 = scalar_select %p37_p7, %s580_s11, %s39_s18  }
  0x10   : > { %s848_s22 = scalar_select %p677_p9, 1, 0 }
  0x11   : > { %p684_p11 = por %p105_p10, %p52_p3  ;;  %s128_s25 = sand.u32 1, %s580_s11  }
  0x12   : > { %s392_s26 = sshll.u32 %s128_s25, 2  ;;  %s393_s27 = sshll.u32 %s588_s13, 6 }
  0x13   : > { %s849_s24 = scalar_select %p684_p11, 1, 0 }
  0x14   : > { %s695_s30 = scalar_lea.hbm %s842_s0, %s393_s27  ;;  %s132_s3 = scalar_lea.vmem [#allocation2], %s392_s26 }
  0x15   : > { %s140_s4 = sshll.u32 %s132_s3, 4  ;;  %p701_p0 = pnand %p415_p13, %p667_p4  ;;  %s697_s4 = int_to_ptr.vmem [resolvable:$true] %s140_s4 }
  0x16   : > { %s129_s6 = scalar_lea.sflag [#allocation3], %s128_s25  ;;  %s480_s7 = scalar_lea.hbm %s695_s30, 64 }
  0x17   : > { %p481_p3 = scmp.ne.s32.totalorder %s695_s30, %s480_s7  ;;  %p482_p5 = pneg %p701_p0 }
  0x18   : > { %s485_s16 = scalar_lea.hbm %s842_s0, 128  ;;  %p486_p4 = scmp.lt.u32.totalorder %s695_s30, %s842_s0 }
  0x19   : > { %p483_p6 = pnand %p482_p5, %p481_p3  ;;  %p487_p10 = scmp.lt.u32.totalorder %s485_s16, %s480_s7 }
  0x1a   : > { %p489_p12 = scmp.lt.u32.totalorder %s480_s7, %s695_s30 }
  0x1b   : > { %p484_p7 = pneg %p483_p6  ;;  %p488_p13 = por %p487_p10, %p486_p4 }
  0x1d   : > { %p490_p1 = por %p489_p12, %p488_p13 }
  0x1f   : > { %p491_p2 = pnand %p490_p1, %p484_p7 }
  0x21   : > { %494 = shalt.err (!%p491_p2)
}
  0x22   : > { %s495_s20 = scalar_lea.vmem %s697_s4, 64  ;;  %s594_s25 = smov [#allocation2]  }
  0x23   : > { %p496_p3 = scmp.ne.s32.totalorder %s697_s4, %s495_s20  ;;  %s500_s26 = sshll.u32 %s594_s25, 4  ;;  %s501_s26 = int_to_ptr.vmem [resolvable:$false] %s500_s26 }
  0x24   : > { %s502_s27 = scalar_lea.vmem %s501_s26, 128  ;;  %p503_p9 = scmp.lt.s32.totalorder %s697_s4, %s501_s26 }
  0x25   : > { %p498_p6 = pnand %p496_p3, %p482_p5  ;;  %p504_p4 = scmp.lt.s32.totalorder %s502_s27, %s495_s20 }
  0x27   : > { %p499_p11 = pneg %p498_p6  ;;  %p505_p10 = por %p504_p4, %p503_p9 }
  0x29   : > { %p506_p12 = pnand %p505_p10, %p499_p11 }
  0x2b   : > { %509 = shalt.err (!%p506_p12)
}
  0x2c   : > { %410 = dma.hbm_to_vmem [thread:$0]  (!%p701_p0), %s695_s30, 64, %s697_s4, %s129_s6  }
  0x2d   : > { %p851_p1 = scmp.lt.s32.totalorder %s592_s14, 3  ;;  %p852_p2 = scmp.ge.s32.totalorder %s592_s14, 1 }
  0x2f   : > { %p146_p5 = pnand %p852_p2, %p851_p1 }
  0x30   : > { %s737_s28 = sand.u32 (!%p146_p5), 1, %s576_s10  }
  0x31   : > { %149 = sbr.rel (%p146_p5) target bundleno = 215 (0xd7), region = 28  ;;  %s395_s29 = sshll.u32 (!%p146_p5), %s737_s28, 2 }
  0x32   : > { %s152_s3 = scalar_lea.sflag (!%p146_p5), [#allocation3], %s737_s28  ;;  %s741_s7 = scalar_lea.vmem (!%p146_p5), [#allocation2], %s395_s29 }
  0x38   : > { %563 = dma.done.wait (%p673_p8), %s152_s3, 64  }
  0x39   : > { %565 = vsyncadd (%p673_p8), %s152_s3, 4294967232  ;;  %v178_v0 = vlaneseq  ;;  %v241_v2 = vld [vmem:[%s741_s7] sm:$0xf]  ;;  %s595_s30 = smov 104   ;;  %s596_s4 = smov 117   ;;  %vm190_vm0 = vcmask 19456  }
  0x3a   : > { %v247_v3 = vld [vmem:[%s741_s7] sm:$0xf]  ;;  %243 = vrot.lane.b32.xlu0 %v241_v2, %s595_s30  ;;  %s396_s21 = sshll.u32 %s737_s28, 3  ;;  %s597_s5 = smov 13   ;;  %vm197_vm1 = vcmask 150656   ;;  %vm204_vm2 = vcmask 281856  }
  0x3b   : > { %v179_v1 = vshrl.u32 %v178_v0, 7  ;;  %249 = vrot.lane.b32.xlu1 %v247_v3, %s596_s4  ;;  %v192_v4 = vld [vmem:[%s741_s7] sm:$0xf]  ;;  %s598_s6 = smov 26   ;;  %s599_s16 = smov 2   ;;  %vm211_vm3 = vcmask 413056  }
  0x3c   : > { %v199_v5 = vld [vmem:[%s741_s7] sm:$0xf]  ;;  %s600_s18 = smov 39   ;;  %s760_s19 = scalar_lea.vmem [#allocation5], %s396_s21  ;;  %vm218_vm4 = vcmask 544256   ;;  %vm225_vm5 = vcmask 675456  }
  0x3d   : > { %v180_v6 = vsub.s32 0, %v179_v1  ;;  %v184_v7 = vsub.s32 1, %v179_v1  ;;  %v176_v8 = vld [vmem:[%s843_s1] sm:$0x3]  ;;  %s601_s20 = smov 15   ;;  %s602_s25 = smov 52  }
  0x3e   : > { %194 = vrot.lane.b32.xlu0 %v192_v4, %s597_s5  ;;  %v253_v9 = vld [vmem:[%s741_s7] sm:$0xf]  ;;  %s603_s26 = smov 28   ;;  %s604_s27 = smov 65   ;;  %vm232_vm6 = vcmask 806656   ;;  %vm239_vm7 = vcmask 937856  }
  0x3f   : > { %201 = vrot.lane.b32.xlu1 %v199_v5, %s598_s6  ;;  %v206_v10 = vld [vmem:[%s741_s7] sm:$0xf]  ;;  %v181_v11 = vrot.slane %v176_v8, %v180_v6  ;;  %v185_v12 = vrot.slane %v176_v8, %v184_v7  ;;  %s605_s29 = smov 41   ;;  %s606_s3 = smov 78  }
  0x40   : > { %v189_v14 = vld [vmem:[%s741_s7] sm:$0xf]  ;;  %s607_s30 = smov 54   ;;  %s608_s4 = smov 91  }
  0x41   : > { %v186_v13 = vcombine.low %v181_v11, %v185_v12  ;;  %v259_v15 = vld [vmem:[%s741_s7] sm:$0xf]  ;;  %s609_s21 = smov 67   ;;  %s306_s5 = sshll.u32 %s760_s19, 4  ;;  %s794_s5 = int_to_ptr.vmem [resolvable:$true] %s306_s5 }
  0x42   : > { %255 = vrot.lane.b32.xlu0 %v253_v9, %s599_s16  ;;  %v213_v16 = vld [vmem:[%s741_s7] sm:$0xf]  ;;  %s290_s16 = scalar_lea.sflag [#allocation4], %s737_s28  ;;  %p853_p9 = scmp.ne.s32.totalorder %s848_s22, 0 }
  0x43   : > { %208 = vrot.lane.b32.xlu1 %v206_v10, %s600_s18  ;;  %188 = vst [vmem:[%s760_s19] sm:$0xff] %v186_v13  ;;  %v265_v17 = vld [vmem:[%s741_s7] sm:$0xf]  ;;  %s510_s18 = scalar_lea.vmem %s794_s5, 128 }
  0x44   : > { %191 = vst.msk [vmem:[%s760_s19] sm:$0xf] %vm190_vm0, %v189_v14  ;;  %v220_v18 = vld [vmem:[%s741_s7] sm:$0xf]  ;;  %p511_p8 = scmp.ne.s32.totalorder %s794_s5, %s510_s18 }
  0x45   : > { %v271_v19 = vld [vmem:[%s741_s7] sm:$0xf] }
  0x46   : > { %261 = vrot.lane.b32.xlu0 %v259_v15, %s601_s20  ;;  %v227_v20 = vld [vmem:[%s741_s7] sm:$0xf]  ;;  %p512_p11 = pnand %p511_p8, %p853_p9 }
  0x47   : > { %215 = vrot.lane.b32.xlu1 %v213_v16, %s602_s25  ;;  %v277_v21 = vld [vmem:[%s741_s7] sm:$0xf] }
  0x48   : > { %v234_v22 = vld [vmem:[%s741_s7] sm:$0xf]  ;;  %p513_p0 = pneg %p512_p11 }
  0x49   : > { %v283_v23 = vld [vmem:[%s741_s7] sm:$0xf]  ;;  %s402_s7 = sshll.u32 %s584_s12, 7  ;;  %s610_s12 = smov [#allocation5]  }
  0x4a   : > { %267 = vrot.lane.b32.xlu0 %v265_v17, %s603_s26  ;;  %s792_s15 = scalar_lea.hbm %s844_s2, %s402_s7  ;;  %s514_s20 = sshll.u32 %s610_s12, 4  ;;  %s515_s20 = int_to_ptr.vmem [resolvable:$false] %s514_s20 }
  0x4b   : > { %222 = vrot.lane.b32.xlu1 %v220_v18, %s604_s27  ;;  %s516_s25 = scalar_lea.vmem %s515_s20, 256  ;;  %p517_p7 = scmp.lt.s32.totalorder %s794_s5, %s515_s20 }
  0x4c   : > { %p518_p13 = scmp.lt.s32.totalorder %s516_s25, %s510_s18 }
  0x4e   : > { %273 = vrot.lane.b32.xlu0 %v271_v19, %s605_s29  ;;  %p519_p3 = por %p518_p13, %p517_p7 }
  0x4f   : > { %229 = vrot.lane.b32.xlu1 %v227_v20, %s606_s3 }
  0x50   : > { %p520_p6 = pnand %p519_p3, %p513_p0 }
  0x52   : > { %279 = vrot.lane.b32.xlu0 %v277_v21, %s607_s30 }
  0x53   : > { %236 = vrot.lane.b32.xlu1 %v234_v22, %s608_s4 }
  0x56   : > { %285 = vrot.lane.b32.xlu0 %v283_v23, %s609_s21 }
  0xac   : > { %v244_v24 = vpop.permute.xlu0 %243 }
  0xad   : > { %v250_v25 = vpop.permute.xlu1 %249  ;;  %246 = vst.msk [vmem:[%s760_s19 + $0x4] sm:$0xf] %vm190_vm0, %v244_v24 }
  0xae   : > { %252 = vst.msk [vmem:[%s760_s19 + $0x4] sm:$0xf] %vm197_vm1, %v250_v25 }
  0xb0   : > { %v195_v26 = vpop.permute.xlu0 %194 }
  0xb1   : > { %v202_v27 = vpop.permute.xlu1 %201  ;;  %198 = vst.msk [vmem:[%s760_s19] sm:$0xf] %vm197_vm1, %v195_v26 }
  0xb2   : > { %205 = vst.msk [vmem:[%s760_s19] sm:$0xf] %vm204_vm2, %v202_v27 }
  0xb4   : > { %v256_v28 = vpop.permute.xlu0 %255 }
  0xb5   : > { %v209_v29 = vpop.permute.xlu1 %208  ;;  %258 = vst.msk [vmem:[%s760_s19 + $0x4] sm:$0xf] %vm204_vm2, %v256_v28 }
  0xb6   : > { %212 = vst.msk [vmem:[%s760_s19] sm:$0xf] %vm211_vm3, %v209_v29 }
  0xb8   : > { %v262_v30 = vpop.permute.xlu0 %261 }
  0xb9   : > { %v216_v31 = vpop.permute.xlu1 %215  ;;  %264 = vst.msk [vmem:[%s760_s19 + $0x4] sm:$0xf] %vm211_vm3, %v262_v30 }
  0xba   : > { %219 = vst.msk [vmem:[%s760_s19] sm:$0xf] %vm218_vm4, %v216_v31 }
  0xbc   : > { %v268_v32 = vpop.permute.xlu0 %267 }
  0xbd   : > { %v223_v33 = vpop.permute.xlu1 %222  ;;  %270 = vst.msk [vmem:[%s760_s19 + $0x4] sm:$0xf] %vm218_vm4, %v268_v32 }
  0xbe   : > { %226 = vst.msk [vmem:[%s760_s19] sm:$0xf] %vm225_vm5, %v223_v33 }
  0xc0   : > { %v274_v34 = vpop.permute.xlu0 %273 }
  0xc1   : > { %v230_v35 = vpop.permute.xlu1 %229  ;;  %276 = vst.msk [vmem:[%s760_s19 + $0x4] sm:$0xf] %vm225_vm5, %v274_v34 }
  0xc2   : > { %233 = vst.msk [vmem:[%s760_s19] sm:$0xf] %vm232_vm6, %v230_v35 }
  0xc4   : > { %v280_v36 = vpop.permute.xlu0 %279 }
  0xc5   : > { %v237_v37 = vpop.permute.xlu1 %236  ;;  %282 = vst.msk [vmem:[%s760_s19 + $0x4] sm:$0xf] %vm232_vm6, %v280_v36 }
  0xc6   : > { %240 = vst.msk [vmem:[%s760_s19] sm:$0xf] %vm239_vm7, %v237_v37 }
  0xc8   : > { %v286_v38 = vpop.permute.xlu0 %285 }
  0xc9   : > { %288 = vst.msk [vmem:[%s760_s19 + $0x4] sm:$0xf] %vm239_vm7, %v286_v38 }
  0xca   : > { %523 = shalt.err (!%p520_p6)
}
  0xcb   : > { %s524_s28 = scalar_lea.hbm %s792_s15, 128  ;;  %s528_s27 = scalar_lea.hbm %s844_s2, 256 }
  0xcc   : > { %p525_p4 = scmp.ne.s32.totalorder %s792_s15, %s524_s28  ;;  %p529_p1 = scmp.lt.u32.totalorder %s792_s15, %s844_s2 }
  0xcd   : > { %p530_p2 = scmp.lt.u32.totalorder %s528_s27, %s524_s28  ;;  %p532_p8 = scmp.lt.u32.totalorder %s524_s28, %s792_s15 }
  0xce   : > { %p526_p10 = pnand %p525_p4, %p853_p9 }
  0xcf   : > { %p531_p5 = por %p530_p2, %p529_p1 }
  0xd0   : > { %p527_p12 = pneg %p526_p10 }
  0xd1   : > { %p533_p11 = por %p532_p8, %p531_p5 }
  0xd3   : > { %p534_p0 = pnand %p533_p11, %p527_p12 }
  0xd5   : > { %537 = shalt.err (!%p534_p0)
}
  0xd6   : > { %405 = dma.vmem_to_hbm [thread:$0]  (%p853_p9), %s794_s5, 128, %s792_s15, %s290_s16  }
  0xd7 PF: > { %s318_s30 = sand.u32 1, %s572_s9   ;;  %p854_p7 = scmp.ne.s32.totalorder %s849_s24, 0 }
  0xd8   : > { %p855_p13 = scmp.ge.s32.totalorder %s592_s14, 2  ;;  %s319_s4 = scalar_lea.sflag [#allocation4], %s318_s30 }
  0xda   : > { %p412_p3 = pnand %p855_p13, %p854_p7 }
  0xdc   : > { %567 = dma.done.wait (!%p412_p3), %s319_s4, 128  }
  0xdd   : > { %569 = vsyncadd (!%p412_p3), %s319_s4, 4294967168  ;;  %s18_s14 = sadd.s32 1, %s592_s14   ;;  %s856_s9 = smov %s576_s10 }
  0xde   : > { %p15_p6 = scmp.ge.s32.totalorder %s18_s14, 4   ;;  %s857_s10 = smov %s580_s11 }
  0xdf   : > { %s858_s11 = smov %s682_s23  ;;  %s859_s12 = smov %s588_s13 }
  0xe0   : > { %s860_s13 = smov %s862_s17  ;;  %17 = sbr.rel (!%p15_p6) target bundleno = 6 (0x6), region = 73 }
  0xe7   :  { %324 = vsyncpa [#allocation3], 1 }
  0xe8   :  { %326 = vsyncpa [#allocation3 + $0x1], 1 }
  0xe9   :  { %327 = vsyncpa [#allocation4], 1 }
  0xea   :  { %329 = vsyncpa [#allocation4 + $0x1], 1 }

</bundles_post_ra>
